<compile_context>
chip_gen: v5e
topology: v5e:2x2
jax: 0.10.0
libtpu: 0.0.40
codegen_flags: <defaults>
</compile_context>

<pallas_src>
import functools

import jax
import jax.numpy as jnp
from jax.experimental import pallas as pl
from jax.experimental.pallas import tpu as pltpu

EPS = 1e-12


def admm_kernel(eta_ref, y_ref, w_ref, b_ref, theta_ref, a_ref,
                abund_ref, out_ref, *, nblocks, chunk_b):
    # eta_ref:   SMEM (1,)            scalar eta
    # y_ref:     VMEM (L, tile_b)     y^T tile (batch on lanes)
    # w_ref:     VMEM (p, L)          W.weight (un-transposed)
    # b_ref:     VMEM (p, p)          B.weight (un-transposed)
    # theta_ref: VMEM (p, 1)          theta as a column
    # a_ref:     VMEM (L, p)          decoder.weight = A_init
    # abund_ref: VMEM (p, tile_b)     abundances^T
    # out_ref:   VMEM (L, tile_b)     reconstruction^T
    p_dim, tile_b = abund_ref.shape
    n_chunks = tile_b // chunk_b

    w = w_ref[...]                       # (p, L)
    b = b_ref[...]                       # (p, p)
    a = a_ref[...]                       # (L, p)
    eta = eta_ref[0]                     # scalar f32 (splat at use sites)

    # Static chunk loop: offsets are Python ints -> zero-cost ref views; each
    # chunk's live state is bounded (~30 vregs at chunk_b=256).
    for c in range(n_chunks):
        c0 = c * chunk_b
        yt = y_ref[:, c0:c0 + chunk_b]                              # (L, chunk)

        # --- per-chunk hoists (JAX does not CSE broadcast_in_dim) ---
        theta_b = jnp.broadcast_to(theta_ref[...], (p_dim, chunk_b))
        # Columns of B lane-broadcast once per chunk: b_cols[k][i, n] = B[i, k].
        b_cols = [jnp.broadcast_to(b[:, k:k + 1], (p_dim, chunk_b))
                  for k in range(p_dim)]

        # Loop-invariant W @ y^T on the MXU (lane-dense (p, chunk) output).
        wy = jnp.dot(w, yt, preferred_element_type=jnp.float32)    # (p, chunk)

        def step(z, d):
            zd = z + d
            # x^T = W@y^T + B@(z+d)^T.  B is p x p (= 8x8): p lane-dense
            # broadcast-MACs on the VPU instead of a per-iteration MXU
            # round-trip (MRF drain would serialize the dependency chain on
            # v5e/v6e).
            x = wy
            for k in range(p_dim):
                x = x + b_cols[k] * zd[k:k + 1, :]
            z_new = jnp.maximum(x - d - theta_b, 0.0)               # Z_block
            d_new = d - eta * (x - z_new)                           # D_block (scalar splat)
            return z_new, d_new

        z = jnp.zeros((p_dim, chunk_b), jnp.float32)
        d = jnp.zeros((p_dim, chunk_b), jnp.float32)
        if nblocks <= 8:
            # Short static unroll: fine for vreg pressure at these shapes.
            for _ in range(nblocks):
                z, d = step(z, d)
        else:
            # Deep unrolls would blow live ranges; give the scheduler a loop.
            z, d = jax.lax.fori_loop(0, nblocks,
                                     lambda _, carry: step(*carry),
                                     (z, d), unroll=2)

        # Abundance normalization: sublane reduce + EXACT divide (approx vrcp
        # was the source of the ~2e-3 error).
        denom = jnp.sum(z, axis=0, keepdims=True) + EPS             # (1, chunk)
        abund = z * (1.0 / denom)                                   # (p, chunk)
        abund_ref[:, c0:c0 + chunk_b] = abund.astype(abund_ref.dtype)

        # Reconstruction: out^T = A_init @ abund^T on the MXU (lane-dense).
        out_ref[:, c0:c0 + chunk_b] = jnp.dot(
            a, abund, preferred_element_type=jnp.float32).astype(out_ref.dtype)


def admmnet_forward(y, W, B, theta, A_init, eta, *, nblocks,
                    tile_b=None, chunk_b=256):
    """y: (bs, L); W: (p, L); B: (p, p); theta: (p,); A_init: (L, p); eta: (1,)."""
    bs, L = y.shape
    p = W.shape[0]
    assert chunk_b % 128 == 0, "chunk_b must be lane-dense (multiple of 128)"

    if tile_b is None:
        # Target a 2-step grid (both v7x TensorCores busy; on single-TC
        # v5e/v6e the one extra ~0.35us step is noise).  Each step loops over
        # chunk_b-wide lane-dense chunks internally.
        half = pl.cdiv(bs, 2)
        tile_b = max(chunk_b, pl.cdiv(half, chunk_b) * chunk_b)
    assert tile_b % chunk_b == 0

    grid_n = pl.cdiv(bs, tile_b)
    bs_pad = grid_n * tile_b
    if bs_pad != bs:
        # Zero-padded pixels stay exactly 0 through the ADMM loop (z = d = 0,
        # abund = 0, out = 0) and are sliced off below.
        y = jnp.pad(y, ((0, bs_pad - bs), (0, 0)))

    y_t = y.T                          # (L, bs_pad): batch on the lane axis
    theta_col = theta.reshape(p, 1)    # (p, 1)

    kernel = functools.partial(admm_kernel, nblocks=nblocks, chunk_b=chunk_b)

    # Advisory cost hint so XLA schedules the surrounding transposes sensibly.
    flops = (2 * bs_pad * p * L                          # W @ y^T
             + nblocks * bs_pad * (2 * p * p + 6 * p)    # B-update + relu/axpy
             + 2 * bs_pad * L * p)                       # decoder
    bytes_accessed = 4 * (bs_pad * (2 * L + p) + p * L + p * p + p + L * p)

    abund_t, out_t = pl.pallas_call(
        kernel,
        out_shape=(
            jax.ShapeDtypeStruct((p, bs_pad), jnp.float32),   # abund^T
            jax.ShapeDtypeStruct((L, bs_pad), jnp.float32),   # reconstruction^T
        ),
        grid_spec=pltpu.PrefetchScalarGridSpec(
            num_scalar_prefetch=0,
            grid=(grid_n,),
            in_specs=[
                pl.BlockSpec(memory_space=pltpu.MemorySpace.SMEM),   # eta (1,)
                pl.BlockSpec((L, tile_b), lambda i: (0, i)),         # y^T
                pl.BlockSpec((p, L), lambda i: (0, 0)),              # W
                pl.BlockSpec((p, p), lambda i: (0, 0)),              # B
                pl.BlockSpec((p, 1), lambda i: (0, 0)),              # theta
                pl.BlockSpec((L, p), lambda i: (0, 0)),              # A_init
            ],
            out_specs=(
                pl.BlockSpec((p, tile_b), lambda i: (0, i)),
                pl.BlockSpec((L, tile_b), lambda i: (0, i)),
            ),
        ),
        compiler_params=pltpu.CompilerParams(
            dimension_semantics=("parallel",)),
        cost_estimate=pl.CostEstimate(
            flops=int(flops), transcendentals=int(bs_pad),
            bytes_accessed=int(bytes_accessed)),
    )(eta, y_t, W, B, theta_col, A_init)

    # Back to the PyTorch-facing (batch, feature) layout.
    abund = abund_t.T
    out = out_t.T
    if bs_pad != bs:
        abund = abund[:bs]
        out = out[:bs]
    return abund, out


def make_params(key, L, p, mu, lambd, eta_init=1.0):
    """Deterministic synthetic replica of ADMMNet.init_architecture."""
    # A_init plays the role of VCA-extracted endmembers: positive, (L, p).
    A_init = jax.random.uniform(key, (L, p), dtype=jnp.float32, minval=0.1, maxval=1.0)
    M = A_init.T @ A_init + mu * jnp.eye(p, dtype=jnp.float32)
    W = jnp.linalg.solve(M, A_init.T)                                  # (p, L)
    B = jnp.linalg.solve(M, mu * jnp.eye(p, dtype=jnp.float32))        # (p, p)
    theta = (lambd / mu) * jnp.ones((p,), dtype=jnp.float32)           # (p,)
    eta = jnp.array([eta_init], dtype=jnp.float32)
    return A_init, W, B, theta, eta


def reference_forward(y, W, B, theta, A_init, eta, nblocks):
    """Plain-JAX reference mirroring the PyTorch forward (batch-major)."""
    bs, _ = y.shape
    p = W.shape[0]
    z = jnp.zeros((bs, p), jnp.float32)
    d = jnp.zeros((bs, p), jnp.float32)
    for _ in range(nblocks):
        x = y @ W.T + (z + d) @ B.T
        z = jax.nn.relu(x - d - theta)
        d = d - eta[0] * (x - z)
    abund = z / (z.sum(1, keepdims=True) + EPS)
    output = abund @ A_init.T
    return abund, output


def _check(y, W, B, theta, A_init, eta, nblocks):
    abund, output = admmnet_forward(y, W, B, theta, A_init, eta, nblocks=nblocks)
    jax.block_until_ready((abund, output))
    abund_ref, output_ref = reference_forward(y, W, B, theta, A_init, eta, nblocks)
    assert abund.shape == abund_ref.shape and output.shape == output_ref.shape
    assert jnp.allclose(abund, abund_ref, atol=1e-4, rtol=1e-4), \
        float(jnp.max(jnp.abs(abund - abund_ref)))
    assert jnp.allclose(output, output_ref, atol=1e-4, rtol=1e-4), \
        float(jnp.max(jnp.abs(output - output_ref)))


if __name__ == "__main__":
    # ADMMNet-consistent shapes: bs pixels, L spectral bands, p endmembers.
    L, p = 32, 8
    nblocks = 6
    mu, lambd = 1.0, 0.1

    key = jax.random.PRNGKey(0)
    k_a, k_y = jax.random.split(key)
    A_init, W, B, theta, eta = make_params(k_a, L, p, mu, lambd)

    # Main case: bs=512 -> grid=(2,) with 256-lane tiles (both v7x TCs busy).
    y = jax.random.uniform(k_y, (512, L), dtype=jnp.float32)
    _check(y, W, B, theta, A_init, eta, nblocks)

    # Ragged-batch case: bs=200 -> padded to one 256-lane tile, grid=(1,).
    _check(y[:200], W, B, theta, A_init, eta, nblocks)

    print("KERNEL_OK")
</pallas_src>

<mosaic_0001>
module attributes {stable_mosaic.version = 11 : i64} {
  func.func @admm_kernel(%arg0: i32, %arg1: memref<1xf32, #tpu.memory_space<smem>>, %arg2: memref<32x256xf32, #tpu.memory_space<vmem>>, %arg3: memref<8x32xf32, #tpu.memory_space<vmem>>, %arg4: memref<8x8xf32, #tpu.memory_space<vmem>>, %arg5: memref<8x1xf32, #tpu.memory_space<vmem>>, %arg6: memref<32x8xf32, #tpu.memory_space<vmem>>, %arg7: memref<8x256xf32, #tpu.memory_space<vmem>>, %arg8: memref<32x256xf32, #tpu.memory_space<vmem>>) attributes {dimension_semantics = [#tpu.dimension_semantics<parallel>], iteration_bounds = array<i64: 2>, scalar_prefetch = 0 : i64, scratch_operands = 0 : i64, tpu.core_type = #tpu.core_type<tc>, window_params = [{transform_indices = @transform_0, window_bounds = array<i64: 1>}, {transform_indices = @transform_1, window_bounds = array<i64: 32, 256>}, {pipeline_mode = #tpu.pipeline_mode<synchronous>, transform_indices = @transform_2, window_bounds = array<i64: 8, 32>}, {pipeline_mode = #tpu.pipeline_mode<synchronous>, transform_indices = @transform_3, window_bounds = array<i64: 8, 8>}, {pipeline_mode = #tpu.pipeline_mode<synchronous>, transform_indices = @transform_4, window_bounds = array<i64: 8, 1>}, {pipeline_mode = #tpu.pipeline_mode<synchronous>, transform_indices = @transform_5, window_bounds = array<i64: 32, 8>}, {transform_indices = @transform_6, window_bounds = array<i64: 8, 256>}, {transform_indices = @transform_7, window_bounds = array<i64: 32, 256>}]} {
    %c0 = arith.constant 0 : index
    %c0_0 = arith.constant 0 : index
    %0 = vector.load %arg3[%c0, %c0_0] : memref<8x32xf32, #tpu.memory_space<vmem>>, vector<8x32xf32>
    %c0_1 = arith.constant 0 : index
    %c0_2 = arith.constant 0 : index
    %1 = vector.load %arg4[%c0_1, %c0_2] : memref<8x8xf32, #tpu.memory_space<vmem>>, vector<8x8xf32>
    %c0_3 = arith.constant 0 : index
    %c0_4 = arith.constant 0 : index
    %2 = vector.load %arg6[%c0_3, %c0_4] : memref<32x8xf32, #tpu.memory_space<vmem>>, vector<32x8xf32>
    %c0_5 = arith.constant 0 : index
    %3 = memref.load %arg1[%c0_5] : memref<1xf32, #tpu.memory_space<smem>>
    %c0_6 = arith.constant 0 : index
    %c0_7 = arith.constant 0 : index
    %4 = vector.load %arg2[%c0_6, %c0_7] : memref<32x256xf32, #tpu.memory_space<vmem>>, vector<32x256xf32>
    %c0_8 = arith.constant 0 : index
    %c0_9 = arith.constant 0 : index
    %5 = vector.load %arg5[%c0_8, %c0_9] : memref<8x1xf32, #tpu.memory_space<vmem>>, vector<8x1xf32>
    %6 = vector.shape_cast %5 : vector<8x1xf32> to vector<8x1xf32>
    %7 = vector.broadcast %6 : vector<8x1xf32> to vector<8x256xf32>
    %8 = vector.extract_strided_slice %1 {offsets = [0, 0], sizes = [8, 1], strides = [1, 1]} : vector<8x8xf32> to vector<8x1xf32>
    %9 = vector.shape_cast %8 : vector<8x1xf32> to vector<8x1xf32>
    %10 = vector.broadcast %9 : vector<8x1xf32> to vector<8x256xf32>
    %11 = vector.extract_strided_slice %1 {offsets = [0, 1], sizes = [8, 1], strides = [1, 1]} : vector<8x8xf32> to vector<8x1xf32>
    %12 = vector.shape_cast %11 : vector<8x1xf32> to vector<8x1xf32>
    %13 = vector.broadcast %12 : vector<8x1xf32> to vector<8x256xf32>
    %14 = vector.extract_strided_slice %1 {offsets = [0, 2], sizes = [8, 1], strides = [1, 1]} : vector<8x8xf32> to vector<8x1xf32>
    %15 = vector.shape_cast %14 : vector<8x1xf32> to vector<8x1xf32>
    %16 = vector.broadcast %15 : vector<8x1xf32> to vector<8x256xf32>
    %17 = vector.extract_strided_slice %1 {offsets = [0, 3], sizes = [8, 1], strides = [1, 1]} : vector<8x8xf32> to vector<8x1xf32>
    %18 = vector.shape_cast %17 : vector<8x1xf32> to vector<8x1xf32>
    %19 = vector.broadcast %18 : vector<8x1xf32> to vector<8x256xf32>
    %20 = vector.extract_strided_slice %1 {offsets = [0, 4], sizes = [8, 1], strides = [1, 1]} : vector<8x8xf32> to vector<8x1xf32>
    %21 = vector.shape_cast %20 : vector<8x1xf32> to vector<8x1xf32>
    %22 = vector.broadcast %21 : vector<8x1xf32> to vector<8x256xf32>
    %23 = vector.extract_strided_slice %1 {offsets = [0, 5], sizes = [8, 1], strides = [1, 1]} : vector<8x8xf32> to vector<8x1xf32>
    %24 = vector.shape_cast %23 : vector<8x1xf32> to vector<8x1xf32>
    %25 = vector.broadcast %24 : vector<8x1xf32> to vector<8x256xf32>
    %26 = vector.extract_strided_slice %1 {offsets = [0, 6], sizes = [8, 1], strides = [1, 1]} : vector<8x8xf32> to vector<8x1xf32>
    %27 = vector.shape_cast %26 : vector<8x1xf32> to vector<8x1xf32>
    %28 = vector.broadcast %27 : vector<8x1xf32> to vector<8x256xf32>
    %29 = vector.extract_strided_slice %1 {offsets = [0, 7], sizes = [8, 1], strides = [1, 1]} : vector<8x8xf32> to vector<8x1xf32>
    %30 = vector.shape_cast %29 : vector<8x1xf32> to vector<8x1xf32>
    %31 = vector.broadcast %30 : vector<8x1xf32> to vector<8x256xf32>
    %cst = arith.constant dense<0.000000e+00> : vector<8x256xf32>
    %32 = tpu.matmul %0, %4, %cst {dimension_numbers = #tpu.dot_dimension_numbers<[1], [0], [0], [1], [0, 0, 1, 1], [], []>} : vector<8x32xf32>, vector<32x256xf32>, vector<8x256xf32> -> vector<8x256xf32>
    %cst_10 = arith.constant 0.000000e+00 : f32
    %33 = vector.broadcast %cst_10 : f32 to vector<8x256xf32>
    %cst_11 = arith.constant 0.000000e+00 : f32
    %34 = vector.broadcast %cst_11 : f32 to vector<8x256xf32>
    %35 = arith.addf %33, %34 : vector<8x256xf32>
    %36 = vector.extract_strided_slice %35 {offsets = [0, 0], sizes = [1, 256], strides = [1, 1]} : vector<8x256xf32> to vector<1x256xf32>
    %37 = vector.broadcast %36 : vector<1x256xf32> to vector<8x256xf32>
    %38 = arith.mulf %10, %37 : vector<8x256xf32>
    %39 = arith.addf %32, %38 : vector<8x256xf32>
    %40 = vector.extract_strided_slice %35 {offsets = [1, 0], sizes = [1, 256], strides = [1, 1]} : vector<8x256xf32> to vector<1x256xf32>
    %41 = vector.broadcast %40 : vector<1x256xf32> to vector<8x256xf32>
    %42 = arith.mulf %13, %41 : vector<8x256xf32>
    %43 = arith.addf %39, %42 : vector<8x256xf32>
    %44 = vector.extract_strided_slice %35 {offsets = [2, 0], sizes = [1, 256], strides = [1, 1]} : vector<8x256xf32> to vector<1x256xf32>
    %45 = vector.broadcast %44 : vector<1x256xf32> to vector<8x256xf32>
    %46 = arith.mulf %16, %45 : vector<8x256xf32>
    %47 = arith.addf %43, %46 : vector<8x256xf32>
    %48 = vector.extract_strided_slice %35 {offsets = [3, 0], sizes = [1, 256], strides = [1, 1]} : vector<8x256xf32> to vector<1x256xf32>
    %49 = vector.broadcast %48 : vector<1x256xf32> to vector<8x256xf32>
    %50 = arith.mulf %19, %49 : vector<8x256xf32>
    %51 = arith.addf %47, %50 : vector<8x256xf32>
    %52 = vector.extract_strided_slice %35 {offsets = [4, 0], sizes = [1, 256], strides = [1, 1]} : vector<8x256xf32> to vector<1x256xf32>
    %53 = vector.broadcast %52 : vector<1x256xf32> to vector<8x256xf32>
    %54 = arith.mulf %22, %53 : vector<8x256xf32>
    %55 = arith.addf %51, %54 : vector<8x256xf32>
    %56 = vector.extract_strided_slice %35 {offsets = [5, 0], sizes = [1, 256], strides = [1, 1]} : vector<8x256xf32> to vector<1x256xf32>
    %57 = vector.broadcast %56 : vector<1x256xf32> to vector<8x256xf32>
    %58 = arith.mulf %25, %57 : vector<8x256xf32>
    %59 = arith.addf %55, %58 : vector<8x256xf32>
    %60 = vector.extract_strided_slice %35 {offsets = [6, 0], sizes = [1, 256], strides = [1, 1]} : vector<8x256xf32> to vector<1x256xf32>
    %61 = vector.broadcast %60 : vector<1x256xf32> to vector<8x256xf32>
    %62 = arith.mulf %28, %61 : vector<8x256xf32>
    %63 = arith.addf %59, %62 : vector<8x256xf32>
    %64 = vector.extract_strided_slice %35 {offsets = [7, 0], sizes = [1, 256], strides = [1, 1]} : vector<8x256xf32> to vector<1x256xf32>
    %65 = vector.broadcast %64 : vector<1x256xf32> to vector<8x256xf32>
    %66 = arith.mulf %31, %65 : vector<8x256xf32>
    %67 = arith.addf %63, %66 : vector<8x256xf32>
    %68 = arith.subf %67, %34 : vector<8x256xf32>
    %69 = arith.subf %68, %7 : vector<8x256xf32>
    %cst_12 = arith.constant 0.000000e+00 : f32
    %70 = vector.broadcast %cst_12 : f32 to vector<8x256xf32>
    %71 = arith.maximumf %69, %70 : vector<8x256xf32>
    %72 = arith.subf %67, %71 : vector<8x256xf32>
    %73 = vector.broadcast %3 : f32 to vector<8x256xf32>
    %74 = arith.mulf %73, %72 : vector<8x256xf32>
    %75 = arith.subf %34, %74 : vector<8x256xf32>
    %76 = arith.addf %71, %75 : vector<8x256xf32>
    %77 = vector.extract_strided_slice %76 {offsets = [0, 0], sizes = [1, 256], strides = [1, 1]} : vector<8x256xf32> to vector<1x256xf32>
    %78 = vector.broadcast %77 : vector<1x256xf32> to vector<8x256xf32>
    %79 = arith.mulf %10, %78 : vector<8x256xf32>
    %80 = arith.addf %32, %79 : vector<8x256xf32>
    %81 = vector.extract_strided_slice %76 {offsets = [1, 0], sizes = [1, 256], strides = [1, 1]} : vector<8x256xf32> to vector<1x256xf32>
    %82 = vector.broadcast %81 : vector<1x256xf32> to vector<8x256xf32>
    %83 = arith.mulf %13, %82 : vector<8x256xf32>
    %84 = arith.addf %80, %83 : vector<8x256xf32>
    %85 = vector.extract_strided_slice %76 {offsets = [2, 0], sizes = [1, 256], strides = [1, 1]} : vector<8x256xf32> to vector<1x256xf32>
    %86 = vector.broadcast %85 : vector<1x256xf32> to vector<8x256xf32>
    %87 = arith.mulf %16, %86 : vector<8x256xf32>
    %88 = arith.addf %84, %87 : vector<8x256xf32>
    %89 = vector.extract_strided_slice %76 {offsets = [3, 0], sizes = [1, 256], strides = [1, 1]} : vector<8x256xf32> to vector<1x256xf32>
    %90 = vector.broadcast %89 : vector<1x256xf32> to vector<8x256xf32>
    %91 = arith.mulf %19, %90 : vector<8x256xf32>
    %92 = arith.addf %88, %91 : vector<8x256xf32>
    %93 = vector.extract_strided_slice %76 {offsets = [4, 0], sizes = [1, 256], strides = [1, 1]} : vector<8x256xf32> to vector<1x256xf32>
    %94 = vector.broadcast %93 : vector<1x256xf32> to vector<8x256xf32>
    %95 = arith.mulf %22, %94 : vector<8x256xf32>
    %96 = arith.addf %92, %95 : vector<8x256xf32>
    %97 = vector.extract_strided_slice %76 {offsets = [5, 0], sizes = [1, 256], strides = [1, 1]} : vector<8x256xf32> to vector<1x256xf32>
    %98 = vector.broadcast %97 : vector<1x256xf32> to vector<8x256xf32>
    %99 = arith.mulf %25, %98 : vector<8x256xf32>
    %100 = arith.addf %96, %99 : vector<8x256xf32>
    %101 = vector.extract_strided_slice %76 {offsets = [6, 0], sizes = [1, 256], strides = [1, 1]} : vector<8x256xf32> to vector<1x256xf32>
    %102 = vector.broadcast %101 : vector<1x256xf32> to vector<8x256xf32>
    %103 = arith.mulf %28, %102 : vector<8x256xf32>
    %104 = arith.addf %100, %103 : vector<8x256xf32>
    %105 = vector.extract_strided_slice %76 {offsets = [7, 0], sizes = [1, 256], strides = [1, 1]} : vector<8x256xf32> to vector<1x256xf32>
    %106 = vector.broadcast %105 : vector<1x256xf32> to vector<8x256xf32>
    %107 = arith.mulf %31, %106 : vector<8x256xf32>
    %108 = arith.addf %104, %107 : vector<8x256xf32>
    %109 = arith.subf %108, %75 : vector<8x256xf32>
    %110 = arith.subf %109, %7 : vector<8x256xf32>
    %cst_13 = arith.constant 0.000000e+00 : f32
    %111 = vector.broadcast %cst_13 : f32 to vector<8x256xf32>
    %112 = arith.maximumf %110, %111 : vector<8x256xf32>
    %113 = arith.subf %108, %112 : vector<8x256xf32>
    %114 = vector.broadcast %3 : f32 to vector<8x256xf32>
    %115 = arith.mulf %114, %113 : vector<8x256xf32>
    %116 = arith.subf %75, %115 : vector<8x256xf32>
    %117 = arith.addf %112, %116 : vector<8x256xf32>
    %118 = vector.extract_strided_slice %117 {offsets = [0, 0], sizes = [1, 256], strides = [1, 1]} : vector<8x256xf32> to vector<1x256xf32>
    %119 = vector.broadcast %118 : vector<1x256xf32> to vector<8x256xf32>
    %120 = arith.mulf %10, %119 : vector<8x256xf32>
    %121 = arith.addf %32, %120 : vector<8x256xf32>
    %122 = vector.extract_strided_slice %117 {offsets = [1, 0], sizes = [1, 256], strides = [1, 1]} : vector<8x256xf32> to vector<1x256xf32>
    %123 = vector.broadcast %122 : vector<1x256xf32> to vector<8x256xf32>
    %124 = arith.mulf %13, %123 : vector<8x256xf32>
    %125 = arith.addf %121, %124 : vector<8x256xf32>
    %126 = vector.extract_strided_slice %117 {offsets = [2, 0], sizes = [1, 256], strides = [1, 1]} : vector<8x256xf32> to vector<1x256xf32>
    %127 = vector.broadcast %126 : vector<1x256xf32> to vector<8x256xf32>
    %128 = arith.mulf %16, %127 : vector<8x256xf32>
    %129 = arith.addf %125, %128 : vector<8x256xf32>
    %130 = vector.extract_strided_slice %117 {offsets = [3, 0], sizes = [1, 256], strides = [1, 1]} : vector<8x256xf32> to vector<1x256xf32>
    %131 = vector.broadcast %130 : vector<1x256xf32> to vector<8x256xf32>
    %132 = arith.mulf %19, %131 : vector<8x256xf32>
    %133 = arith.addf %129, %132 : vector<8x256xf32>
    %134 = vector.extract_strided_slice %117 {offsets = [4, 0], sizes = [1, 256], strides = [1, 1]} : vector<8x256xf32> to vector<1x256xf32>
    %135 = vector.broadcast %134 : vector<1x256xf32> to vector<8x256xf32>
    %136 = arith.mulf %22, %135 : vector<8x256xf32>
    %137 = arith.addf %133, %136 : vector<8x256xf32>
    %138 = vector.extract_strided_slice %117 {offsets = [5, 0], sizes = [1, 256], strides = [1, 1]} : vector<8x256xf32> to vector<1x256xf32>
    %139 = vector.broadcast %138 : vector<1x256xf32> to vector<8x256xf32>
    %140 = arith.mulf %25, %139 : vector<8x256xf32>
    %141 = arith.addf %137, %140 : vector<8x256xf32>
    %142 = vector.extract_strided_slice %117 {offsets = [6, 0], sizes = [1, 256], strides = [1, 1]} : vector<8x256xf32> to vector<1x256xf32>
    %143 = vector.broadcast %142 : vector<1x256xf32> to vector<8x256xf32>
    %144 = arith.mulf %28, %143 : vector<8x256xf32>
    %145 = arith.addf %141, %144 : vector<8x256xf32>
    %146 = vector.extract_strided_slice %117 {offsets = [7, 0], sizes = [1, 256], strides = [1, 1]} : vector<8x256xf32> to vector<1x256xf32>
    %147 = vector.broadcast %146 : vector<1x256xf32> to vector<8x256xf32>
    %148 = arith.mulf %31, %147 : vector<8x256xf32>
    %149 = arith.addf %145, %148 : vector<8x256xf32>
    %150 = arith.subf %149, %116 : vector<8x256xf32>
    %151 = arith.subf %150, %7 : vector<8x256xf32>
    %cst_14 = arith.constant 0.000000e+00 : f32
    %152 = vector.broadcast %cst_14 : f32 to vector<8x256xf32>
    %153 = arith.maximumf %151, %152 : vector<8x256xf32>
    %154 = arith.subf %149, %153 : vector<8x256xf32>
    %155 = vector.broadcast %3 : f32 to vector<8x256xf32>
    %156 = arith.mulf %155, %154 : vector<8x256xf32>
    %157 = arith.subf %116, %156 : vector<8x256xf32>
    %158 = arith.addf %153, %157 : vector<8x256xf32>
    %159 = vector.extract_strided_slice %158 {offsets = [0, 0], sizes = [1, 256], strides = [1, 1]} : vector<8x256xf32> to vector<1x256xf32>
    %160 = vector.broadcast %159 : vector<1x256xf32> to vector<8x256xf32>
    %161 = arith.mulf %10, %160 : vector<8x256xf32>
    %162 = arith.addf %32, %161 : vector<8x256xf32>
    %163 = vector.extract_strided_slice %158 {offsets = [1, 0], sizes = [1, 256], strides = [1, 1]} : vector<8x256xf32> to vector<1x256xf32>
    %164 = vector.broadcast %163 : vector<1x256xf32> to vector<8x256xf32>
    %165 = arith.mulf %13, %164 : vector<8x256xf32>
    %166 = arith.addf %162, %165 : vector<8x256xf32>
    %167 = vector.extract_strided_slice %158 {offsets = [2, 0], sizes = [1, 256], strides = [1, 1]} : vector<8x256xf32> to vector<1x256xf32>
    %168 = vector.broadcast %167 : vector<1x256xf32> to vector<8x256xf32>
    %169 = arith.mulf %16, %168 : vector<8x256xf32>
    %170 = arith.addf %166, %169 : vector<8x256xf32>
    %171 = vector.extract_strided_slice %158 {offsets = [3, 0], sizes = [1, 256], strides = [1, 1]} : vector<8x256xf32> to vector<1x256xf32>
    %172 = vector.broadcast %171 : vector<1x256xf32> to vector<8x256xf32>
    %173 = arith.mulf %19, %172 : vector<8x256xf32>
    %174 = arith.addf %170, %173 : vector<8x256xf32>
    %175 = vector.extract_strided_slice %158 {offsets = [4, 0], sizes = [1, 256], strides = [1, 1]} : vector<8x256xf32> to vector<1x256xf32>
    %176 = vector.broadcast %175 : vector<1x256xf32> to vector<8x256xf32>
    %177 = arith.mulf %22, %176 : vector<8x256xf32>
    %178 = arith.addf %174, %177 : vector<8x256xf32>
    %179 = vector.extract_strided_slice %158 {offsets = [5, 0], sizes = [1, 256], strides = [1, 1]} : vector<8x256xf32> to vector<1x256xf32>
    %180 = vector.broadcast %179 : vector<1x256xf32> to vector<8x256xf32>
    %181 = arith.mulf %25, %180 : vector<8x256xf32>
    %182 = arith.addf %178, %181 : vector<8x256xf32>
    %183 = vector.extract_strided_slice %158 {offsets = [6, 0], sizes = [1, 256], strides = [1, 1]} : vector<8x256xf32> to vector<1x256xf32>
    %184 = vector.broadcast %183 : vector<1x256xf32> to vector<8x256xf32>
    %185 = arith.mulf %28, %184 : vector<8x256xf32>
    %186 = arith.addf %182, %185 : vector<8x256xf32>
    %187 = vector.extract_strided_slice %158 {offsets = [7, 0], sizes = [1, 256], strides = [1, 1]} : vector<8x256xf32> to vector<1x256xf32>
    %188 = vector.broadcast %187 : vector<1x256xf32> to vector<8x256xf32>
    %189 = arith.mulf %31, %188 : vector<8x256xf32>
    %190 = arith.addf %186, %189 : vector<8x256xf32>
    %191 = arith.subf %190, %157 : vector<8x256xf32>
    %192 = arith.subf %191, %7 : vector<8x256xf32>
    %cst_15 = arith.constant 0.000000e+00 : f32
    %193 = vector.broadcast %cst_15 : f32 to vector<8x256xf32>
    %194 = arith.maximumf %192, %193 : vector<8x256xf32>
    %195 = arith.subf %190, %194 : vector<8x256xf32>
    %196 = vector.broadcast %3 : f32 to vector<8x256xf32>
    %197 = arith.mulf %196, %195 : vector<8x256xf32>
    %198 = arith.subf %157, %197 : vector<8x256xf32>
    %199 = arith.addf %194, %198 : vector<8x256xf32>
    %200 = vector.extract_strided_slice %199 {offsets = [0, 0], sizes = [1, 256], strides = [1, 1]} : vector<8x256xf32> to vector<1x256xf32>
    %201 = vector.broadcast %200 : vector<1x256xf32> to vector<8x256xf32>
    %202 = arith.mulf %10, %201 : vector<8x256xf32>
    %203 = arith.addf %32, %202 : vector<8x256xf32>
    %204 = vector.extract_strided_slice %199 {offsets = [1, 0], sizes = [1, 256], strides = [1, 1]} : vector<8x256xf32> to vector<1x256xf32>
    %205 = vector.broadcast %204 : vector<1x256xf32> to vector<8x256xf32>
    %206 = arith.mulf %13, %205 : vector<8x256xf32>
    %207 = arith.addf %203, %206 : vector<8x256xf32>
    %208 = vector.extract_strided_slice %199 {offsets = [2, 0], sizes = [1, 256], strides = [1, 1]} : vector<8x256xf32> to vector<1x256xf32>
    %209 = vector.broadcast %208 : vector<1x256xf32> to vector<8x256xf32>
    %210 = arith.mulf %16, %209 : vector<8x256xf32>
    %211 = arith.addf %207, %210 : vector<8x256xf32>
    %212 = vector.extract_strided_slice %199 {offsets = [3, 0], sizes = [1, 256], strides = [1, 1]} : vector<8x256xf32> to vector<1x256xf32>
    %213 = vector.broadcast %212 : vector<1x256xf32> to vector<8x256xf32>
    %214 = arith.mulf %19, %213 : vector<8x256xf32>
    %215 = arith.addf %211, %214 : vector<8x256xf32>
    %216 = vector.extract_strided_slice %199 {offsets = [4, 0], sizes = [1, 256], strides = [1, 1]} : vector<8x256xf32> to vector<1x256xf32>
    %217 = vector.broadcast %216 : vector<1x256xf32> to vector<8x256xf32>
    %218 = arith.mulf %22, %217 : vector<8x256xf32>
    %219 = arith.addf %215, %218 : vector<8x256xf32>
    %220 = vector.extract_strided_slice %199 {offsets = [5, 0], sizes = [1, 256], strides = [1, 1]} : vector<8x256xf32> to vector<1x256xf32>
    %221 = vector.broadcast %220 : vector<1x256xf32> to vector<8x256xf32>
    %222 = arith.mulf %25, %221 : vector<8x256xf32>
    %223 = arith.addf %219, %222 : vector<8x256xf32>
    %224 = vector.extract_strided_slice %199 {offsets = [6, 0], sizes = [1, 256], strides = [1, 1]} : vector<8x256xf32> to vector<1x256xf32>
    %225 = vector.broadcast %224 : vector<1x256xf32> to vector<8x256xf32>
    %226 = arith.mulf %28, %225 : vector<8x256xf32>
    %227 = arith.addf %223, %226 : vector<8x256xf32>
    %228 = vector.extract_strided_slice %199 {offsets = [7, 0], sizes = [1, 256], strides = [1, 1]} : vector<8x256xf32> to vector<1x256xf32>
    %229 = vector.broadcast %228 : vector<1x256xf32> to vector<8x256xf32>
    %230 = arith.mulf %31, %229 : vector<8x256xf32>
    %231 = arith.addf %227, %230 : vector<8x256xf32>
    %232 = arith.subf %231, %198 : vector<8x256xf32>
    %233 = arith.subf %232, %7 : vector<8x256xf32>
    %cst_16 = arith.constant 0.000000e+00 : f32
    %234 = vector.broadcast %cst_16 : f32 to vector<8x256xf32>
    %235 = arith.maximumf %233, %234 : vector<8x256xf32>
    %236 = arith.subf %231, %235 : vector<8x256xf32>
    %237 = vector.broadcast %3 : f32 to vector<8x256xf32>
    %238 = arith.mulf %237, %236 : vector<8x256xf32>
    %239 = arith.subf %198, %238 : vector<8x256xf32>
    %240 = arith.addf %235, %239 : vector<8x256xf32>
    %241 = vector.extract_strided_slice %240 {offsets = [0, 0], sizes = [1, 256], strides = [1, 1]} : vector<8x256xf32> to vector<1x256xf32>
    %242 = vector.broadcast %241 : vector<1x256xf32> to vector<8x256xf32>
    %243 = arith.mulf %10, %242 : vector<8x256xf32>
    %244 = arith.addf %32, %243 : vector<8x256xf32>
    %245 = vector.extract_strided_slice %240 {offsets = [1, 0], sizes = [1, 256], strides = [1, 1]} : vector<8x256xf32> to vector<1x256xf32>
    %246 = vector.broadcast %245 : vector<1x256xf32> to vector<8x256xf32>
    %247 = arith.mulf %13, %246 : vector<8x256xf32>
    %248 = arith.addf %244, %247 : vector<8x256xf32>
    %249 = vector.extract_strided_slice %240 {offsets = [2, 0], sizes = [1, 256], strides = [1, 1]} : vector<8x256xf32> to vector<1x256xf32>
    %250 = vector.broadcast %249 : vector<1x256xf32> to vector<8x256xf32>
    %251 = arith.mulf %16, %250 : vector<8x256xf32>
    %252 = arith.addf %248, %251 : vector<8x256xf32>
    %253 = vector.extract_strided_slice %240 {offsets = [3, 0], sizes = [1, 256], strides = [1, 1]} : vector<8x256xf32> to vector<1x256xf32>
    %254 = vector.broadcast %253 : vector<1x256xf32> to vector<8x256xf32>
    %255 = arith.mulf %19, %254 : vector<8x256xf32>
    %256 = arith.addf %252, %255 : vector<8x256xf32>
    %257 = vector.extract_strided_slice %240 {offsets = [4, 0], sizes = [1, 256], strides = [1, 1]} : vector<8x256xf32> to vector<1x256xf32>
    %258 = vector.broadcast %257 : vector<1x256xf32> to vector<8x256xf32>
    %259 = arith.mulf %22, %258 : vector<8x256xf32>
    %260 = arith.addf %256, %259 : vector<8x256xf32>
    %261 = vector.extract_strided_slice %240 {offsets = [5, 0], sizes = [1, 256], strides = [1, 1]} : vector<8x256xf32> to vector<1x256xf32>
    %262 = vector.broadcast %261 : vector<1x256xf32> to vector<8x256xf32>
    %263 = arith.mulf %25, %262 : vector<8x256xf32>
    %264 = arith.addf %260, %263 : vector<8x256xf32>
    %265 = vector.extract_strided_slice %240 {offsets = [6, 0], sizes = [1, 256], strides = [1, 1]} : vector<8x256xf32> to vector<1x256xf32>
    %266 = vector.broadcast %265 : vector<1x256xf32> to vector<8x256xf32>
    %267 = arith.mulf %28, %266 : vector<8x256xf32>
    %268 = arith.addf %264, %267 : vector<8x256xf32>
    %269 = vector.extract_strided_slice %240 {offsets = [7, 0], sizes = [1, 256], strides = [1, 1]} : vector<8x256xf32> to vector<1x256xf32>
    %270 = vector.broadcast %269 : vector<1x256xf32> to vector<8x256xf32>
    %271 = arith.mulf %31, %270 : vector<8x256xf32>
    %272 = arith.addf %268, %271 : vector<8x256xf32>
    %273 = arith.subf %272, %239 : vector<8x256xf32>
    %274 = arith.subf %273, %7 : vector<8x256xf32>
    %cst_17 = arith.constant 0.000000e+00 : f32
    %275 = vector.broadcast %cst_17 : f32 to vector<8x256xf32>
    %276 = arith.maximumf %274, %275 : vector<8x256xf32>
    %cst_18 = arith.constant dense<0.000000e+00> : vector<256xf32>
    %277 = vector.multi_reduction <add>, %276, %cst_18 [0] : vector<8x256xf32> to vector<256xf32>
    %278 = vector.shape_cast %277 : vector<256xf32> to vector<1x256xf32>
    %cst_19 = arith.constant 9.99999996E-13 : f32
    %279 = vector.broadcast %cst_19 : f32 to vector<1x256xf32>
    %280 = arith.addf %278, %279 : vector<1x256xf32>
    %cst_20 = arith.constant 1.000000e+00 : f32
    %281 = vector.broadcast %cst_20 : f32 to vector<1x256xf32>
    %282 = arith.divf %281, %280 : vector<1x256xf32>
    %283 = vector.broadcast %282 : vector<1x256xf32> to vector<8x256xf32>
    %284 = arith.mulf %276, %283 : vector<8x256xf32>
    %c0_21 = arith.constant 0 : index
    %c0_22 = arith.constant 0 : index
    %285 = vector.load %arg7[%c0_21, %c0_22] : memref<8x256xf32, #tpu.memory_space<vmem>>, vector<8x256xf32>
    tpu.vector_store %arg7[%c0_21, %c0_22], %284 {strides = array<i32>} : memref<8x256xf32, #tpu.memory_space<vmem>>, vector<8x256xf32>,
    %cst_23 = arith.constant dense<0.000000e+00> : vector<32x256xf32>
    %286 = tpu.matmul %2, %284, %cst_23 {dimension_numbers = #tpu.dot_dimension_numbers<[1], [0], [0], [1], [0, 0, 1, 1], [], []>} : vector<32x8xf32>, vector<8x256xf32>, vector<32x256xf32> -> vector<32x256xf32>
    %c0_24 = arith.constant 0 : index
    %c0_25 = arith.constant 0 : index
    %287 = vector.load %arg8[%c0_24, %c0_25] : memref<32x256xf32, #tpu.memory_space<vmem>>, vector<32x256xf32>
    tpu.vector_store %arg8[%c0_24, %c0_25], %286 {strides = array<i32>} : memref<32x256xf32, #tpu.memory_space<vmem>>, vector<32x256xf32>,
    return
  }
  func.func @transform_0(%arg0: i32) -> i32 {
    %c0_i32 = arith.constant 0 : i32
    %c0_i32_0 = arith.constant 0 : i32
    return %c0_i32 : i32
  }
  func.func @transform_1(%arg0: i32) -> (i32, i32) {
    %c0_i32 = arith.constant 0 : i32
    %c0_i32_0 = arith.constant 0 : i32
    return %c0_i32, %arg0 : i32, i32
  }
  func.func @transform_2(%arg0: i32) -> (i32, i32) {
    %c0_i32 = arith.constant 0 : i32
    %c0_i32_0 = arith.constant 0 : i32
    %c0_i32_1 = arith.constant 0 : i32
    return %c0_i32, %c0_i32_0 : i32, i32
  }
  func.func @transform_3(%arg0: i32) -> (i32, i32) {
    %c0_i32 = arith.constant 0 : i32
    %c0_i32_0 = arith.constant 0 : i32
    %c0_i32_1 = arith.constant 0 : i32
    return %c0_i32, %c0_i32_0 : i32, i32
  }
  func.func @transform_4(%arg0: i32) -> (i32, i32) {
    %c0_i32 = arith.constant 0 : i32
    %c0_i32_0 = arith.constant 0 : i32
    %c0_i32_1 = arith.constant 0 : i32
    return %c0_i32, %c0_i32_0 : i32, i32
  }
  func.func @transform_5(%arg0: i32) -> (i32, i32) {
    %c0_i32 = arith.constant 0 : i32
    %c0_i32_0 = arith.constant 0 : i32
    %c0_i32_1 = arith.constant 0 : i32
    return %c0_i32, %c0_i32_0 : i32, i32
  }
  func.func @transform_6(%arg0: i32) -> (i32, i32) {
    %c0_i32 = arith.constant 0 : i32
    %c0_i32_0 = arith.constant 0 : i32
    return %c0_i32, %arg0 : i32, i32
  }
  func.func @transform_7(%arg0: i32) -> (i32, i32) {
    %c0_i32 = arith.constant 0 : i32
    %c0_i32_0 = arith.constant 0 : i32
    return %c0_i32, %arg0 : i32, i32
  }
}

</mosaic_0001>

<bundles_post_ra>
// kernel: tpu_custom_call.1
= control target key start
LH: loop header
LB: loop body
LE: loop exit
PB: predicated region body
PF: predicated region fallthrough
CT: control target
= control target key end

     0   :  { %s1667_s0 = inlined_call_operand.<no memory space> [shape: f32[1], index: 0, kind: input, shape index: {}]   ;;  %s1668_s1 = inlined_call_operand.hbm [shape: f32[32,512], index: 1, kind: input, shape index: {}]   ;;  %s1669_s2 = inlined_call_operand.vmem [shape: f32[8,32], index: 2, kind: input, shape index: {}]   ;;  %s1670_s3 = inlined_call_operand.vmem [shape: f32[8,8], index: 3, kind: input, shape index: {}]   ;;  %s1671_s4 = inlined_call_operand.vmem [shape: f32[8,1], index: 4, kind: input, shape index: {}]   ;;  %s1672_s5 = inlined_call_operand.vmem [shape: f32[32,8], index: 5, kind: input, shape index: {}]   ;;  %s1673_s6 = inlined_call_operand.hbm [shape: f32[8,512], index: 6, kind: output, shape index: {0}]   ;;  %s1674_s7 = inlined_call_operand.hbm [shape: f32[32,512], index: 7, kind: output, shape index: {1}]  }
   0x1   :  { %1676 = sst [smem:[#allocation12_spill]] %s1668_s1 }
   0x2   :  { %13 = sst [smem:[#allocation2]] %s1667_s0 }
   0x3   :  { %14 = vsyncpa [#allocation4], 0 }
   0x4   :  { %16 = vsyncpa [#allocation4 + $0x1], 0 }
   0x5   :  { %17 = vsyncpa [#allocation5], 0 }
   0x6   :  { %19 = vsyncpa [#allocation5 + $0x1], 0 }
   0x7   :  { %20 = vsyncpa [#allocation8], 0 }
   0x8   :  { %22 = vsyncpa [#allocation8 + $0x1], 0  ;;  %s1319_s26 = smov 0   ;;  %s1321_s27 = smov 0  }
   0x9   :  { %s1323_s28 = smov 0   ;;  %s1325_s29 = smov 0  }
   0xa LB: > { %s1340_s0 = sadd.s32 4294967295, %s1260_s29   ;;  %s1020_s30 = sadd.s32 4294967294, %s1260_s29   ;;  %s1260_s29 = sphi %s1325_s29, %s1687_s29   ;;  %s1256_s28 = sphi %s1323_s28, %s1686_s28   ;;  %s1252_s27 = sphi %s1321_s27, %s1685_s27   ;;  %s1248_s26 = sphi %s1319_s26, %s1684_s26  }
   0xb   : > { %s1344_s8 = sadd.s32 1, %s1260_s29   ;;  %s56_s9 = sadd.s32 1, %s1256_s28 }
   0xc   : > { %s53_s10 = ssub.s32 %s1260_s29, %s1344_s8  ;;  %p63_p0 = scmp.ne.s32.totalorder %s1256_s28, %s1252_s27 }
   0xd   : > { %p54_p1 = scmp.eq.s32.totalorder %s53_s10, 0  ;;  %p64_p2 = scmp.eq.s32.totalorder %s1260_s29, 0 }
   0xe   : > { %p69_p3 = scmp.ne.s32.totalorder %s1252_s27, %s1248_s26  ;;  %p70_p4 = scmp.eq.s32.totalorder %s1340_s0, 0 }
   0xf   : > { %s1356_s11 = scalar_select %p54_p1, %s1256_s28, %s56_s9  }
  0x10   : > { %p1358_p5 = por %p64_p2, %p63_p0  ;;  %p1362_p6 = por %p70_p4, %p69_p3 }
  0x11   : > { %p177_p7 = scmp.eq.s32.totalorder %s1340_s0, 1  ;;  %p183_p8 = scmp.eq.s32.totalorder %s1020_s30, 1 }
  0x12   : > { %p1022_p9 = scmp.ge.s32.totalorder %s1260_s29, 2  ;;  %p1070_p10 = scmp.lt.s32.totalorder %s1260_s29, 2 }
  0x13   : > { %p1369_p11 = por %p177_p7, %p63_p0  ;;  %p1373_p12 = por %p183_p8, %p69_p3 }
  0x14   : > { %s244_s16 = sand.u32 1, %s1256_s28   ;;  %s1048_s17 = sshll.u32 %s1260_s29, 4 }
  0x15   : > { %s1023_s18 = sshll.u32 %s244_s16, 6  ;;  %s1681_s1 = sld [smem:[#allocation12_spill]] }
  0x16   : > { %s248_s23 = scalar_lea.vmem [#allocation3], %s1023_s18  ;;  %p1384_p13 = pnand %p1070_p10, %p1358_p5 }
  0x17   : > { %s256_s24 = sshll.u32 %s248_s23, 4  ;;  %p1026_p0 = scmp.ge.s32.totalorder %s1260_s29, 1  ;;  %s257_s24 = int_to_ptr.vmem [resolvable:$true] %s256_s24 }
  0x18   : > { %s245_s30 = scalar_lea.sflag [#allocation4], %s244_s16  ;;  %p1136_p2 = pneg %p1384_p13 }
  0x1b   : > { %s253_s21 = scalar_lea.hbm %s1681_s1, %s1048_s17  ;;  %s1139_s19 = scalar_lea.hbm %s1681_s1, 128 }
  0x1c   : > { %s254_s22 = sshll.u32 %s253_s21, 4  ;;  %s255_s22 = int_to_ptr.hbm [resolvable:$true] %s254_s22 }
  0x1d   : > { %s1132_s9 = sshra.s32 %s255_s22, 4  ;;  %s1133_s9 = int_to_ptr.hbm [resolvable:$true] %s1132_s9 }
  0x1e   : > { %s1134_s10 = scalar_lea.hbm %s1133_s9, 64  ;;  %p1140_p5 = scmp.lt.s32.totalorder %s1133_s9, %s1681_s1 }
  0x1f   : > { %p1135_p1 = scmp.ne.s32.totalorder %s1133_s9, %s1134_s10  ;;  %p1141_p7 = scmp.lt.s32.totalorder %s1139_s19, %s1134_s10 }
  0x21   : > { %p1137_p3 = pnand %p1136_p2, %p1135_p1  ;;  %p1142_p8 = por %p1141_p7, %p1140_p5 }
  0x23   : > { %p1138_p4 = pneg %p1137_p3 }
  0x25   : > { %p1143_p10 = pnand %p1142_p8, %p1138_p4 }
  0x27   : > { %1146 = shalt.err (!%p1143_p10)
}
  0x28   : > { %s1262_s16 = smov 512   ;;  %s1263_s21 = smov 256  }
  0x29   : > { %s1264_s23 = smov 16   ;;  %p264_p1 = scmp.lt.s32.totalorder %s1260_s29, 3 }
  0x2a   : > { %1062 = dma.hbm_to_vmem [thread:$0]  (!%p1384_p13), %s255_s22, 1024, %s257_s24, %s245_s30, %s1262_s16, %s1263_s21, %s1264_s23  }
  0x2b   : > { %p265_p2 = pnand %p1026_p0, %p264_p1 }
  0x2c   : > { %s1403_s17 = sand.u32 (!%p265_p2), 1, %s1252_s27  }
  0x2d   : > { %268 = sbr.rel (%p265_p2) target bundleno = 575 (0x23f), region = 44  ;;  %s1675_s9 = sshll.u32 (!%p265_p2), %s1403_s17, 6 }
  0x2e   : > { %s271_s10 = scalar_lea.sflag (!%p265_p2), [#allocation4], %s1403_s17  ;;  %s274_s18 = scalar_lea.vmem (!%p265_p2), [#allocation3], %s1675_s9 }
  0x32   : > { %1235 = dma.done.wait (%p1362_p6), %s271_s10, 1024  }
  0x33   : > { %1237 = vsyncadd (%p1362_p6), %s271_s10, 4294966272  ;;  %v1265_v0 = vmov 0   ;;  %v1266_v1 = vmov 2   ;;  %v1267_v2 = vmov 4   ;;  %v327_v3 = vld [vmem:[%s274_s18 + $0x30] sm:$0xff]  ;;  %v328_v4 = vld [vmem:[%s274_s18 + $0x38] sm:$0xff] }
  0x34   : > { %1118 = vset.pattern.permute.xlu0 %v1265_v0  ;;  %1120 = vset.pattern.permute.xlu1 %v1266_v1  ;;  %v325_v5 = vld [vmem:[%s274_s18 + $0x20] sm:$0xff]  ;;  %v326_v6 = vld [vmem:[%s274_s18 + $0x28] sm:$0xff]  ;;  %v323_v7 = vld [vmem:[%s274_s18 + $0x10] sm:$0xff]  ;;  %vm368_vm0 = vcmask 261120   ;;  %v1268_v13 = vmov 1   ;;  %v1269_v14 = vmov 3  }
  0x35   : > { %1122 = vset.pattern.permute.xlu2 %v1267_v2  ;;  %384 = vmatpush.msra.mxu0 %v327_v3  ;;  %v324_v8 = vld [vmem:[%s274_s18 + $0x18] sm:$0xff]  ;;  %v315_v9 = vld [vmem:[%s1670_s3] sm:$0xff]  ;;  %v322_v11 = vld [vmem:[%s274_s18 + $0x8] sm:$0xff]  ;;  %v1270_v15 = vmov 5   ;;  %v1271_v17 = vmov 6   ;;  %v1272_v18 = vmov 7  }
  0x36   : > { %404 = vmatpush.msra.mxu1 %v328_v4  ;;  %v321_v10 = vld [vmem:[%s274_s18] sm:$0xff]  ;;  %337 = vperm.xlu0 %1118, %v315_v9   ;;  %s320_s12 = sld [smem:[#allocation2]]  ;;  %s1028_s20 = sshll.u32 %s1403_s17, 4  ;;  %vm799_vm5 = vcmask 64512  }
  0x37   : > { %385 = vmatpush.msra.mxu0 %v325_v5  ;;  %345 = vperm.xlu1 %1120, %v315_v9   ;;  %v314_v12 = vld [vmem:[%s1669_s2] sm:$0xff]  ;;  %s1592_s23 = scalar_lea.vmem [#allocation6], %s1028_s20  ;;  %s1049_s30 = sshll.u32 %s1340_s0, 4 }
  0x38   : > { %405 = vmatpush.msra.mxu1 %v326_v6  ;;  %353 = vperm.xlu2 %1122, %v315_v9   ;;  %v329_v16 = vld [vmem:[%s1671_s4] sm:$0xff]  ;;  %s895_s20 = scalar_lea.hbm %s1673_s6, %s1049_s30  ;;  %s897_s16 = sshll.u32 %s1592_s23, 4  ;;  %s898_s16 = int_to_ptr.vmem [resolvable:$true] %s897_s16 }
  0x39   : > { %386 = vmatpush.msra.mxu0 %v323_v7  ;;  %s899_s21 = sshll.u32 %s895_s20, 4  ;;  %s879_s10 = scalar_lea.sflag [#allocation5], %s1403_s17  ;;  %s900_s21 = int_to_ptr.hbm [resolvable:$true] %s899_s21 }
  0x3a   : > { %406 = vmatpush.msra.mxu1 %v324_v8  ;;  %s1176_s18 = sshra.s32 %s900_s21, 4  ;;  %s1182_s25 = scalar_lea.hbm %s1673_s6, 32  ;;  %s1177_s18 = int_to_ptr.hbm [resolvable:$true] %s1176_s18 }
  0x3b   : > { %387 = vmatpush.msra.mxu0 %v321_v10  ;;  %s1178_s22 = scalar_lea.hbm %s1177_s18, 16  ;;  %p1183_p3 = scmp.lt.s32.totalorder %s1177_s18, %s1673_s6 }
  0x3c   : > { %407 = vmatpush.msra.mxu1 %v322_v11  ;;  %1030 = vmatmul.msk.f32.vlgmr.msra.gmra.mxu0 %vm368_vm0, %v314_v12  ;;  %v1456_v58 = vstv %s320_s12  ;;  %p1179_p6 = scmp.ne.s32.totalorder %s1177_s18, %s1178_s22  ;;  %p1184_p4 = scmp.lt.s32.totalorder %s1182_s25, %s1178_s22 }
  0x3d   : > { %1031 = vmatmul.msk.f32.vlgmr.msra.gmra.mxu1 %vm368_vm0, %v314_v12 }
  0x3e   : > { %1119 = vset.pattern.permute.xlu0 %v1268_v13  ;;  %p1180_p13 = pnand %p1179_p6, %p1369_p11  ;;  %p1185_p5 = por %p1184_p4, %p1183_p3 }
  0x3f   : > { %1121 = vset.pattern.permute.xlu1 %v1269_v14  ;;  %341 = vperm.xlu0 %1119, %v315_v9  }
  0x40   : > { %349 = vperm.xlu1 %1121, %v315_v9   ;;  %1123 = vset.pattern.permute.xlu2 %v1270_v15  ;;  %p1181_p0 = pneg %p1180_p13 }
  0x41   : > { %357 = vperm.xlu2 %1123, %v315_v9  }
  0x42   : > { %p1186_p7 = pnand %p1185_p5, %p1181_p0 }
  0x47   : > { %1126 = vset.pattern.permute.xlu0 %v1265_v0 }
  0x48   : > { %1124 = vset.pattern.permute.xlu1 %v1271_v17  ;;  %332 = vperm.xlu0 %1126, %v329_v16  }
  0x49   : > { %361 = vperm.xlu1 %1124, %v315_v9   ;;  %1125 = vset.pattern.permute.xlu2 %v1272_v18 }
  0x4a   : > { %365 = vperm.xlu2 %1125, %v315_v9  }
  0x50   : > { %1127 = vset.pattern.permute.xlu0 %v1272_v18 }
  0x92   : > { %v1426_v21 = vpop.permute.xlu2 %353 }
  0x93   : > { %v424_v38 = vmul.f32 0.0, %v1426_v21 }
  0x9b   : > { %v1432_v24 = vpop.permute.xlu2 %357 }
  0x9c   : > { %v427_v42 = vmul.f32 0.0, %v1432_v24 }
  0xa4   : > { %v1447_v41 = vpop.permute.xlu2 %365 }
  0xa5   : > { %v433_v48 = vmul.f32 0.0, %v1447_v41 }
  0xa8   : > { %v1422_v19 = vpop.permute.xlu0 %337 }
  0xa9   : > { %v1424_v20 = vpop.permute.xlu1 %345  ;;  %v412_v25 = vmul.f32 0.0, %v1422_v19 }
  0xaa   : > { %v418_v32 = vmul.f32 0.0, %v1424_v20 }
  0xb1   : > { %v1428_v22 = vpop.permute.xlu0 %341 }
  0xb2   : > { %v1430_v23 = vpop.permute.xlu1 %349  ;;  %v415_v26 = vmul.f32 0.0, %v1428_v22 }
  0xb3   : > { %v421_v36 = vmul.f32 0.0, %v1430_v23 }
  0xb9   : > { %v1436_v27 = vpop.f32.mrf.mxu0 }
  0xba   : > { %v1438_v28 = vpop.f32.mrf.mxu1  ;;  %v413_v29 = vadd.f32 %v412_v25, %v1436_v27  ;;  %v1452_v51 = vpop.permute.xlu0 %332 }
  0xbb   : > { %v414_v30 = vadd.f32 %v412_v25, %v1438_v28  ;;  %v1444_v37 = vpop.permute.xlu1 %361 }
  0xbc   : > { %v416_v31 = vadd.f32 %v415_v26, %v413_v29  ;;  %v430_v45 = vmul.f32 0.0, %v1444_v37 }
  0xbd   : > { %v417_v33 = vadd.f32 %v415_v26, %v414_v30 }
  0xbe   : > { %v419_v34 = vadd.f32 %v418_v32, %v416_v31 }
  0xbf   : > { %v420_v35 = vadd.f32 %v418_v32, %v417_v33 }
  0xc0   : > { %v422_v39 = vadd.f32 %v421_v36, %v419_v34 }
  0xc1   : > { %v423_v40 = vadd.f32 %v421_v36, %v420_v35 }
  0xc2   : > { %v425_v43 = vadd.f32 %v424_v38, %v422_v39 }
  0xc3   : > { %v426_v44 = vadd.f32 %v424_v38, %v423_v40 }
  0xc4   : > { %v428_v46 = vadd.f32 %v427_v42, %v425_v43 }
  0xc5   : > { %v429_v47 = vadd.f32 %v427_v42, %v426_v44 }
  0xc6   : > { %v431_v49 = vadd.f32 %v430_v45, %v428_v46 }
  0xc7   : > { %v432_v50 = vadd.f32 %v430_v45, %v429_v47 }
  0xc8   : > { %v434_v52 = vadd.f32 %v433_v48, %v431_v49 }
  0xc9   : > { %v435_v53 = vadd.f32 %v433_v48, %v432_v50 }
  0xca   : > { %v436_v54 = vsub.f32 %v434_v52, %v1452_v51 }
  0xcb   : > { %v437_v55 = vsub.f32 %v435_v53, %v1452_v51 }
  0xcc   : > { %v438_v56 = vmax.f32 %v436_v54, 0.0 }
  0xcd   : > { %v439_v57 = vmax.f32 %v437_v55, 0.0 }
  0xce   : > { %v440_v59 = vsub.f32 %v434_v52, %v438_v56 }
  0xcf   : > { %v441_v60 = vsub.f32 %v435_v53, %v439_v57 }
  0xd0   : > { %v443_v61 = vmul.f32 %v1456_v58, %v440_v59 }
  0xd1   : > { %v444_v62 = vmul.f32 %v1456_v58, %v441_v60 }
  0xd2   : > { %v445_v63 = vsub.f32 0.0, %v443_v61 }
  0xd3   : > { %v1460_v0 = vsub.f32 0.0, %v444_v62 }
  0xd4   : > { %v447_v1 = vadd.f32 %v445_v63, %v438_v56 }
  0xd5   : > { %v448_v4 = vadd.f32 %v1460_v0, %v439_v57 }
  0xd6   : > { %v449_v2 = vperm.slane %v447_v1, 0  ;;  %v455_v3 = vperm.slane %v447_v1, 1  ;;  %v461_v6 = vperm.slane %v447_v1, 2  ;;  %v467_v7 = vperm.slane %v447_v1, 3 }
  0xd7   : > { %v450_v10 = vperm.slane %v448_v4, 0  ;;  %v456_v11 = vperm.slane %v448_v4, 1  ;;  %v473_v12 = vperm.slane %v447_v1, 4  ;;  %v462_v16 = vperm.slane %v448_v4, 2 }
  0xd8   : > { %v451_v5 = vmul.f32 %v449_v2, %v1422_v19  ;;  %v457_v9 = vmul.f32 %v455_v3, %v1428_v22  ;;  %v463_v14 = vmul.f32 %v461_v6, %v1424_v20  ;;  %v469_v17 = vmul.f32 %v467_v7, %v1430_v23 }
  0xd9   : > { %v452_v15 = vmul.f32 %v450_v10, %v1422_v19  ;;  %v479_v18 = vperm.slane %v447_v1, 5  ;;  %v458_v29 = vmul.f32 %v456_v11, %v1428_v22  ;;  %v468_v30 = vperm.slane %v448_v4, 3 }
  0xda   : > { %v453_v8 = vadd.f32 %v451_v5, %v1436_v27  ;;  %v475_v31 = vmul.f32 %v473_v12, %v1426_v21  ;;  %v485_v32 = vperm.slane %v447_v1, 6  ;;  %v464_v35 = vmul.f32 %v462_v16, %v1424_v20 }
  0xdb   : > { %v454_v26 = vadd.f32 %v452_v15, %v1438_v28  ;;  %v474_v36 = vperm.slane %v448_v4, 4  ;;  %v481_v38 = vmul.f32 %v479_v18, %v1432_v24  ;;  %v491_v39 = vperm.slane %v447_v1, 7 }
  0xdc   : > { %v459_v13 = vadd.f32 %v457_v9, %v453_v8  ;;  %v470_v43 = vmul.f32 %v468_v30, %v1430_v23  ;;  %v480_v44 = vperm.slane %v448_v4, 5  ;;  %v487_v45 = vmul.f32 %v485_v32, %v1444_v37 }
  0xdd   : > { %v460_v34 = vadd.f32 %v458_v29, %v454_v26  ;;  %v476_v48 = vmul.f32 %v474_v36, %v1426_v21  ;;  %v486_v49 = vperm.slane %v448_v4, 6  ;;  %v493_v50 = vmul.f32 %v491_v39, %v1447_v41 }
  0xde   : > { %v465_v25 = vadd.f32 %v463_v14, %v459_v13  ;;  %v482_v54 = vmul.f32 %v480_v44, %v1432_v24  ;;  %v492_v55 = vperm.slane %v448_v4, 7 }
  0xdf   : > { %v466_v42 = vadd.f32 %v464_v35, %v460_v34  ;;  %v488_v59 = vmul.f32 %v486_v49, %v1444_v37 }
  0xe0   : > { %v471_v33 = vadd.f32 %v469_v17, %v465_v25  ;;  %v494_v62 = vmul.f32 %v492_v55, %v1447_v41 }
  0xe1   : > { %v472_v47 = vadd.f32 %v470_v43, %v466_v42 }
  0xe2   : > { %v477_v40 = vadd.f32 %v475_v31, %v471_v33 }
  0xe3   : > { %v478_v53 = vadd.f32 %v476_v48, %v472_v47 }
  0xe4   : > { %v483_v46 = vadd.f32 %v481_v38, %v477_v40 }
  0xe5   : > { %v484_v57 = vadd.f32 %v482_v54, %v478_v53 }
  0xe6   : > { %v489_v52 = vadd.f32 %v487_v45, %v483_v46 }
  0xe7   : > { %v490_v61 = vadd.f32 %v488_v59, %v484_v57 }
  0xe8   : > { %v495_v56 = vadd.f32 %v493_v50, %v489_v52 }
  0xe9   : > { %v496_v2 = vadd.f32 %v494_v62, %v490_v61 }
  0xea   : > { %v497_v60 = vsub.f32 %v495_v56, %v445_v63 }
  0xeb   : > { %v498_v5 = vsub.f32 %v496_v2, %v1460_v0 }
  0xec   : > { %v499_v1 = vsub.f32 %v497_v60, %v1452_v51 }
  0xed   : > { %v500_v7 = vsub.f32 %v498_v5, %v1452_v51 }
  0xee   : > { %v501_v3 = vmax.f32 %v499_v1, 0.0 }
  0xef   : > { %v502_v4 = vmax.f32 %v500_v7, 0.0 }
  0xf0   : > { %v503_v6 = vsub.f32 %v495_v56, %v501_v3 }
  0xf1   : > { %v504_v10 = vsub.f32 %v496_v2, %v502_v4 }
  0xf2   : > { %v505_v8 = vmul.f32 %v503_v6, %v1456_v58 }
  0xf3   : > { %v506_v14 = vmul.f32 %v504_v10, %v1456_v58 }
  0xf4   : > { %v507_v9 = vsub.f32 %v445_v63, %v505_v8 }
  0xf5   : > { %v1490_v26 = vsub.f32 %v1460_v0, %v506_v14 }
  0xf6   : > { %v509_v11 = vadd.f32 %v507_v9, %v501_v3 }
  0xf7   : > { %v510_v31 = vadd.f32 %v1490_v26, %v502_v4 }
  0xf8   : > { %v511_v12 = vperm.slane %v509_v11, 0  ;;  %v517_v13 = vperm.slane %v509_v11, 1  ;;  %v523_v16 = vperm.slane %v509_v11, 2  ;;  %v529_v25 = vperm.slane %v509_v11, 3 }
  0xf9   : > { %v535_v30 = vperm.slane %v509_v11, 4  ;;  %v541_v32 = vperm.slane %v509_v11, 5  ;;  %v512_v35 = vperm.slane %v510_v31, 0  ;;  %v518_v36 = vperm.slane %v510_v31, 1 }
  0xfa   : > { %v513_v15 = vmul.f32 %v511_v12, %v1422_v19  ;;  %v519_v18 = vmul.f32 %v517_v13, %v1428_v22  ;;  %v525_v63 = vmul.f32 %v523_v16, %v1424_v20  ;;  %v531_v34 = vmul.f32 %v529_v25, %v1430_v23 }
  0xfb   : > { %v547_v38 = vperm.slane %v509_v11, 6  ;;  %v537_v40 = vmul.f32 %v535_v30, %v1426_v21  ;;  %v514_v42 = vmul.f32 %v512_v35, %v1422_v19  ;;  %v524_v0 = vperm.slane %v510_v31, 2 }
  0xfc   : > { %v515_v17 = vadd.f32 %v513_v15, %v1436_v27  ;;  %v543_v43 = vmul.f32 %v541_v32, %v1432_v24  ;;  %v553_v44 = vperm.slane %v509_v11, 7  ;;  %v520_v47 = vmul.f32 %v518_v36, %v1428_v22 }
  0xfd   : > { %v516_v46 = vadd.f32 %v514_v42, %v1438_v28  ;;  %v530_v48 = vperm.slane %v510_v31, 3  ;;  %v549_v49 = vmul.f32 %v547_v38, %v1444_v37  ;;  %v526_v53 = vmul.f32 %v524_v0, %v1424_v20 }
  0xfe   : > { %v521_v29 = vadd.f32 %v519_v18, %v515_v17  ;;  %v536_v54 = vperm.slane %v510_v31, 4  ;;  %v555_v55 = vmul.f32 %v553_v44, %v1447_v41  ;;  %v542_v60 = vperm.slane %v510_v31, 5 }
  0xff   : > { %v522_v52 = vadd.f32 %v520_v47, %v516_v46  ;;  %v532_v59 = vmul.f32 %v530_v48, %v1430_v23  ;;  %v548_v2 = vperm.slane %v510_v31, 6  ;;  %v554_v7 = vperm.slane %v510_v31, 7 }
 0x100   : > { %v527_v33 = vadd.f32 %v525_v63, %v521_v29  ;;  %v538_v1 = vmul.f32 %v536_v54, %v1426_v21  ;;  %v544_v6 = vmul.f32 %v542_v60, %v1432_v24 }
 0x101   : > { %v528_v57 = vadd.f32 %v526_v53, %v522_v52  ;;  %v550_v10 = vmul.f32 %v548_v2, %v1444_v37  ;;  %v556_v13 = vmul.f32 %v554_v7, %v1447_v41 }
 0x102   : > { %v533_v39 = vadd.f32 %v531_v34, %v527_v33 }
 0x103   : > { %v534_v62 = vadd.f32 %v532_v59, %v528_v57 }
 0x104   : > { %v539_v45 = vadd.f32 %v537_v40, %v533_v39 }
 0x105   : > { %v540_v5 = vadd.f32 %v538_v1, %v534_v62 }
 0x106   : > { %v545_v50 = vadd.f32 %v543_v43, %v539_v45 }
 0x107   : > { %v546_v4 = vadd.f32 %v544_v6, %v540_v5 }
 0x108   : > { %v551_v56 = vadd.f32 %v549_v49, %v545_v50 }
 0x109   : > { %v552_v12 = vadd.f32 %v550_v10, %v546_v4 }
 0x10a   : > { %v557_v61 = vadd.f32 %v555_v55, %v551_v56 }
 0x10b   : > { %v558_v15 = vadd.f32 %v556_v13, %v552_v12 }
 0x10c   : > { %v559_v3 = vsub.f32 %v557_v61, %v507_v9 }
 0x10d   : > { %v560_v17 = vsub.f32 %v558_v15, %v1490_v26 }
 0x10e   : > { %v561_v8 = vsub.f32 %v559_v3, %v1452_v51 }
 0x10f   : > { %v562_v25 = vsub.f32 %v560_v17, %v1452_v51 }
 0x110   : > { %v563_v11 = vmax.f32 %v561_v8, 0.0 }
 0x111   : > { %v564_v31 = vmax.f32 %v562_v25, 0.0 }
 0x112   : > { %v565_v14 = vsub.f32 %v557_v61, %v563_v11 }
 0x113   : > { %v566_v38 = vsub.f32 %v558_v15, %v564_v31 }
 0x114   : > { %v567_v16 = vmul.f32 %v565_v14, %v1456_v58 }
 0x116   : > { %v569_v18 = vsub.f32 %v507_v9, %v567_v16  ;;  %v568_v9 = vmul.f32 %v566_v38, %v1456_v58 }
 0x118   : > { %v571_v29 = vadd.f32 %v569_v18, %v563_v11  ;;  %v1519_v45 = vsub.f32 %v1490_v26, %v568_v9 }
 0x11a   : > { %v573_v63 = vperm.slane %v571_v29, 0  ;;  %v579_v30 = vperm.slane %v571_v29, 1  ;;  %v585_v33 = vperm.slane %v571_v29, 2  ;;  %v591_v36 = vperm.slane %v571_v29, 3 }
 0x11b   : > { %v597_v42 = vperm.slane %v571_v29, 4  ;;  %v603_v44 = vperm.slane %v571_v29, 5  ;;  %v609_v48 = vperm.slane %v571_v29, 6  ;;  %v572_v49 = vadd.f32 %v1519_v45, %v564_v31 }
 0x11c   : > { %v575_v32 = vmul.f32 %v573_v63, %v1422_v19  ;;  %v581_v35 = vmul.f32 %v579_v30, %v1428_v22  ;;  %v587_v40 = vmul.f32 %v585_v33, %v1424_v20  ;;  %v593_v43 = vmul.f32 %v591_v36, %v1430_v23 }
 0x11d   : > { %v599_v47 = vmul.f32 %v597_v42, %v1426_v21  ;;  %v615_v50 = vperm.slane %v571_v29, 7  ;;  %v605_v53 = vmul.f32 %v603_v44, %v1432_v24  ;;  %v574_v54 = vperm.slane %v572_v49, 0 }
 0x11e   : > { %v577_v34 = vadd.f32 %v575_v32, %v1436_v27  ;;  %v580_v55 = vperm.slane %v572_v49, 1  ;;  %v611_v57 = vmul.f32 %v609_v48, %v1444_v37  ;;  %v586_v60 = vperm.slane %v572_v49, 2 }
 0x11f   : > { %v576_v59 = vmul.f32 %v574_v54, %v1422_v19  ;;  %v617_v26 = vmul.f32 %v615_v50, %v1447_v41  ;;  %v592_v2 = vperm.slane %v572_v49, 3  ;;  %v598_v7 = vperm.slane %v572_v49, 4 }
 0x120   : > { %v583_v39 = vadd.f32 %v581_v35, %v577_v34  ;;  %v582_v1 = vmul.f32 %v580_v55, %v1428_v22  ;;  %v588_v6 = vmul.f32 %v586_v60, %v1424_v20  ;;  %v604_v11 = vperm.slane %v572_v49, 5 }
 0x121   : > { %v578_v62 = vadd.f32 %v576_v59, %v1438_v28  ;;  %v594_v10 = vmul.f32 %v592_v2, %v1430_v23  ;;  %v600_v14 = vmul.f32 %v598_v7, %v1426_v21  ;;  %v610_v15 = vperm.slane %v572_v49, 6 }
 0x122   : > { %v589_v0 = vadd.f32 %v587_v40, %v583_v39  ;;  %v606_v25 = vmul.f32 %v604_v11, %v1432_v24  ;;  %v616_v29 = vperm.slane %v572_v49, 7 }
 0x123   : > { %v584_v5 = vadd.f32 %v582_v1, %v578_v62  ;;  %v612_v31 = vmul.f32 %v610_v15, %v1444_v37 }
 0x124   : > { %v595_v46 = vadd.f32 %v593_v43, %v589_v0  ;;  %v618_v34 = vmul.f32 %v616_v29, %v1447_v41 }
 0x125   : > { %v590_v4 = vadd.f32 %v588_v6, %v584_v5 }
 0x126   : > { %v601_v52 = vadd.f32 %v599_v47, %v595_v46 }
 0x127   : > { %v596_v13 = vadd.f32 %v594_v10, %v590_v4 }
 0x128   : > { %v607_v56 = vadd.f32 %v605_v53, %v601_v52 }
 0x129   : > { %v602_v17 = vadd.f32 %v600_v14, %v596_v13 }
 0x12a   : > { %v613_v61 = vadd.f32 %v611_v57, %v607_v56 }
 0x12b   : > { %v608_v30 = vadd.f32 %v606_v25, %v602_v17 }
 0x12c   : > { %v619_v3 = vadd.f32 %v617_v26, %v613_v61 }
 0x12d   : > { %v614_v33 = vadd.f32 %v612_v31, %v608_v30 }
 0x12e   : > { %v621_v8 = vsub.f32 %v619_v3, %v569_v18 }
 0x12f   : > { %v620_v36 = vadd.f32 %v618_v34, %v614_v33 }
 0x130   : > { %v623_v12 = vsub.f32 %v621_v8, %v1452_v51 }
 0x131   : > { %v622_v42 = vsub.f32 %v620_v36, %v1519_v45 }
 0x132   : > { %v625_v16 = vmax.f32 %v623_v12, 0.0 }
 0x133   : > { %v624_v47 = vsub.f32 %v622_v42, %v1452_v51 }
 0x134   : > { %v627_v63 = vsub.f32 %v619_v3, %v625_v16 }
 0x135   : > { %v626_v50 = vmax.f32 %v624_v47, 0.0 }
 0x136   : > { %v629_v32 = vmul.f32 %v627_v63, %v1456_v58 }
 0x137   : > { %v628_v55 = vsub.f32 %v620_v36, %v626_v50 }
 0x138   : > { %v631_v35 = vsub.f32 %v569_v18, %v629_v32 }
 0x139   : > { %v630_v60 = vmul.f32 %v628_v55, %v1456_v58 }
 0x13a   : > { %v633_v38 = vadd.f32 %v631_v35, %v625_v16 }
 0x13b   : > { %v1548_v1 = vsub.f32 %v1519_v45, %v630_v60 }
 0x13c   : > { %v635_v39 = vperm.slane %v633_v38, 0  ;;  %v641_v40 = vperm.slane %v633_v38, 1  ;;  %v647_v0 = vperm.slane %v633_v38, 2  ;;  %v653_v46 = vperm.slane %v633_v38, 3 }
 0x13d   : > { %v659_v18 = vperm.slane %v633_v38, 4  ;;  %v665_v54 = vperm.slane %v633_v38, 5  ;;  %v671_v59 = vperm.slane %v633_v38, 6  ;;  %v677_v62 = vperm.slane %v633_v38, 7 }
 0x13e   : > { %v637_v9 = vmul.f32 %v635_v39, %v1422_v19  ;;  %v643_v44 = vmul.f32 %v641_v40, %v1428_v22  ;;  %v649_v49 = vmul.f32 %v647_v0, %v1424_v20  ;;  %v655_v53 = vmul.f32 %v653_v46, %v1430_v23 }
 0x13f   : > { %v661_v57 = vmul.f32 %v659_v18, %v1426_v21  ;;  %v667_v61 = vmul.f32 %v665_v54, %v1432_v24  ;;  %v673_v3 = vmul.f32 %v671_v59, %v1444_v37  ;;  %v634_v5 = vadd.f32 %v1548_v1, %v626_v50 }
 0x140   : > { %v639_v43 = vadd.f32 %v637_v9, %v1436_v27  ;;  %v679_v7 = vmul.f32 %v677_v62, %v1447_v41 }
 0x141   : > { %v636_v8 = vperm.slane %v634_v5, 0  ;;  %v642_v4 = vperm.slane %v634_v5, 1  ;;  %v648_v12 = vperm.slane %v634_v5, 2  ;;  %v654_v15 = vperm.slane %v634_v5, 3 }
 0x142   : > { %v645_v48 = vadd.f32 %v643_v44, %v639_v43  ;;  %v660_v29 = vperm.slane %v634_v5, 4  ;;  %v666_v32 = vperm.slane %v634_v5, 5  ;;  %v672_v42 = vperm.slane %v634_v5, 6 }
 0x143   : > { %v638_v11 = vmul.f32 %v636_v8, %v1422_v19  ;;  %v644_v45 = vmul.f32 %v642_v4, %v1428_v22  ;;  %v650_v25 = vmul.f32 %v648_v12, %v1424_v20  ;;  %v656_v31 = vmul.f32 %v654_v15, %v1430_v23 }
 0x144   : > { %v651_v52 = vadd.f32 %v649_v49, %v645_v48  ;;  %v662_v36 = vmul.f32 %v660_v29, %v1426_v21  ;;  %v668_v40 = vmul.f32 %v666_v32, %v1432_v24  ;;  %v674_v44 = vmul.f32 %v672_v42, %v1444_v37 }
 0x145   : > { %v640_v14 = vadd.f32 %v638_v11, %v1438_v28  ;;  %v678_v46 = vperm.slane %v634_v5, 7 }
 0x146   : > { %v657_v56 = vadd.f32 %v655_v53, %v651_v52 }
 0x147   : > { %v646_v17 = vadd.f32 %v644_v45, %v640_v14  ;;  %v680_v52 = vmul.f32 %v678_v46, %v1447_v41 }
 0x148   : > { %v663_v26 = vadd.f32 %v661_v57, %v657_v56 }
 0x149   : > { %v652_v30 = vadd.f32 %v650_v25, %v646_v17 }
 0x14a   : > { %v669_v2 = vadd.f32 %v667_v61, %v663_v26 }
 0x14b   : > { %v658_v34 = vadd.f32 %v656_v31, %v652_v30 }
 0x14c   : > { %v675_v6 = vadd.f32 %v673_v3, %v669_v2 }
 0x14d   : > { %v664_v39 = vadd.f32 %v662_v36, %v658_v34 }
 0x14e   : > { %v681_v10 = vadd.f32 %v679_v7, %v675_v6 }
 0x14f   : > { %v670_v0 = vadd.f32 %v668_v40, %v664_v39 }
 0x150   : > { %v683_v13 = vsub.f32 %v681_v10, %v631_v35 }
 0x151   : > { %v676_v49 = vadd.f32 %v674_v44, %v670_v0 }
 0x152   : > { %v685_v16 = vsub.f32 %v683_v13, %v1452_v51 }
 0x153   : > { %v682_v56 = vadd.f32 %v680_v52, %v676_v49 }
 0x154   : > { %v687_v63 = vmax.f32 %v685_v16, 0.0 }
 0x155   : > { %v684_v60 = vsub.f32 %v682_v56, %v1548_v1 }
 0x156   : > { %v689_v33 = vsub.f32 %v681_v10, %v687_v63 }
 0x157   : > { %v686_v2 = vsub.f32 %v684_v60, %v1452_v51 }
 0x158   : > { %v691_v38 = vmul.f32 %v689_v33, %v1456_v58 }
 0x159   : > { %v688_v6 = vmax.f32 %v686_v2, 0.0 }
 0x15a   : > { %v693_v9 = vsub.f32 %v631_v35, %v691_v38 }
 0x15b   : > { %v690_v10 = vsub.f32 %v682_v56, %v688_v6 }
 0x15c   : > { %v695_v43 = vadd.f32 %v693_v9, %v687_v63 }
 0x15d   : > { %v692_v13 = vmul.f32 %v690_v10, %v1456_v58 }
 0x15e   : > { %v697_v47 = vperm.slane %v695_v43, 0  ;;  %v703_v48 = vperm.slane %v695_v43, 1  ;;  %v709_v50 = vperm.slane %v695_v43, 2  ;;  %v715_v55 = vperm.slane %v695_v43, 3 }
 0x15f   : > { %v721_v59 = vperm.slane %v695_v43, 4  ;;  %v727_v62 = vperm.slane %v695_v43, 5  ;;  %v739_v4 = vperm.slane %v695_v43, 7  ;;  %v694_v15 = vsub.f32 %v1548_v1, %v692_v13 }
 0x160   : > { %v699_v18 = vmul.f32 %v697_v47, %v1422_v19  ;;  %v705_v54 = vmul.f32 %v703_v48, %v1428_v22  ;;  %v711_v57 = vmul.f32 %v709_v50, %v1424_v20  ;;  %v717_v61 = vmul.f32 %v715_v55, %v1430_v23 }
 0x161   : > { %v723_v5 = vmul.f32 %v721_v59, %v1426_v21  ;;  %v729_v8 = vmul.f32 %v727_v62, %v1432_v24  ;;  %v741_v45 = vmul.f32 %v739_v4, %v1447_v41  ;;  %v696_v17 = vadd.f32 %v694_v15, %v688_v6  ;;  %v317_v4 = vld [vmem:[%s1672_s5 + $0x8] sm:$0xff] }
 0x162   : > { %v701_v53 = vadd.f32 %v699_v18, %v1436_v27  ;;  %v733_v27 = vperm.slane %v695_v43, 6 }
 0x163   : > { %v698_v29 = vperm.slane %v696_v17, 0  ;;  %v704_v63 = vperm.slane %v696_v17, 1  ;;  %v710_v32 = vperm.slane %v696_v17, 2  ;;  %v716_v36 = vperm.slane %v696_v17, 3 }
 0x164   : > { %v707_v35 = vadd.f32 %v705_v54, %v701_v53  ;;  %v735_v12 = vmul.f32 %v733_v27, %v1444_v37  ;;  %v722_v40 = vperm.slane %v696_v17, 4  ;;  %v728_v43 = vperm.slane %v696_v17, 5 }
 0x165   : > { %v700_v31 = vmul.f32 %v698_v29, %v1422_v19  ;;  %v706_v58 = vmul.f32 %v704_v63, %v1428_v22  ;;  %v712_v1 = vmul.f32 %v710_v32, %v1424_v20  ;;  %v718_v0 = vmul.f32 %v716_v36, %v1430_v23 }
 0x166   : > { %v713_v26 = vadd.f32 %v711_v57, %v707_v35  ;;  %v724_v19 = vmul.f32 %v722_v40, %v1426_v21  ;;  %v734_v47 = vperm.slane %v696_v17, 6  ;;  %v730_v22 = vmul.f32 %v728_v43, %v1432_v24 }
 0x167   : > { %v702_v34 = vadd.f32 %v700_v31, %v1438_v28  ;;  %v740_v49 = vperm.slane %v696_v17, 7 }
 0x168   : > { %v719_v3 = vadd.f32 %v717_v61, %v713_v26  ;;  %v736_v20 = vmul.f32 %v734_v47, %v1444_v37 }
 0x169   : > { %v708_v39 = vadd.f32 %v706_v58, %v702_v34  ;;  %v742_v54 = vmul.f32 %v740_v49, %v1447_v41 }
 0x16a   : > { %v725_v7 = vadd.f32 %v723_v5, %v719_v3 }
 0x16c   : > { %v731_v11 = vadd.f32 %v729_v8, %v725_v7 }
 0x16e   : > { %v737_v14 = vadd.f32 %v735_v12, %v731_v11  ;;  %v318_v11 = vld [vmem:[%s1672_s5 + $0x10] sm:$0xff]  ;;  %v316_v12 = vld [vmem:[%s1672_s5] sm:$0xff] }
 0x170   : > { %v743_v16 = vadd.f32 %v741_v45, %v737_v14 }
 0x172   : > { %v745_v25 = vsub.f32 %v743_v16, %v693_v9  ;;  %v714_v9 = vadd.f32 %v712_v1, %v708_v39 }
 0x174   : > { %v747_v30 = vsub.f32 %v745_v25, %v1452_v51  ;;  %v720_v46 = vadd.f32 %v718_v0, %v714_v9  ;;  %v319_v25 = vld [vmem:[%s1672_s5 + $0x18] sm:$0xff] }
 0x176   : > { %v749_v33 = vmax.f32 %v747_v30, 0.0  ;;  %v726_v28 = vadd.f32 %v724_v19, %v720_v46 }
 0x178   : > { %v751_v38 = vrot.slane %v749_v33, 4  ;;  %v732_v50 = vadd.f32 %v730_v22, %v726_v28 }
 0x17a   : > { %v752_v42 = vadd.f32 %v751_v38, %v749_v33  ;;  %v738_v53 = vadd.f32 %v736_v20, %v732_v50 }
 0x17c   : > { %v753_v44 = vrot.slane %v752_v42, 2  ;;  %v744_v55 = vadd.f32 %v742_v54, %v738_v53 }
 0x17e   : > { %v754_v48 = vadd.f32 %v753_v44, %v752_v42  ;;  %v746_v56 = vsub.f32 %v744_v55, %v694_v15 }
 0x180   : > { %v755_v18 = vrot.slane %v754_v48, 1  ;;  %v748_v21 = vsub.f32 %v746_v56, %v1452_v51 }
 0x182   : > { %v756_v52 = vadd.f32 %v755_v18, %v754_v48  ;;  %v750_v35 = vmax.f32 %v748_v21, 0.0 }
 0x184   : > { %v763_v23 = vadd.f32 1e-12, %v756_v52  ;;  %v757_v24 = vrot.slane %v750_v35, 4 }
 0x186   : > { %1128 = vrcp.f32 %v763_v23  ;;  %v758_v26 = vadd.f32 %v757_v24, %v750_v35  ;;  %v776_v61 = vand.u32 2147483648, %v763_v23  ;;  %v774_v37 = vand.u32 2147483647, %v763_v23 }
 0x187   : > { %vm770_vm2 = vweird.f32 %v763_v23 }
 0x188   : > { %v759_v2 = vrot.slane %v758_v26, 2  ;;  %v777_v5 = vor.u32 1.1754944e-38, %v776_v61  ;;  %vm775_vm4 = vcmp.eq.f32.partialorder %v774_v37, 8.507059e+37 }
 0x18a   : > { %v760_v41 = vadd.f32 %v759_v2, %v758_v26 }
 0x18c   : > { %v1129_v57 = vpop.eup %1128  ;;  %v761_v51 = vrot.slane %v760_v41, 1 }
 0x18d   : > { %v766_v59 = vmul.f32 %v1129_v57, %v763_v23  ;;  %vm771_vm1 = vweird.f32 %v1129_v57 }
 0x18e   : > { %vm772_vm3 = vmor %vm770_vm2, %vm771_vm1  ;;  %v762_v8 = vadd.f32 %v761_v51, %v760_v41 }
 0x18f   : > { %v767_v60 = vsub.f32 1.0, %v766_v59 }
 0x190   : > { %v764_v10 = vadd.f32 1e-12, %v762_v8 }
 0x191   : > { %v768_v62 = vmul.f32 %v1129_v57, %v767_v60 }
 0x192   : > { %1130 = vrcp.f32 %v764_v10  ;;  %v791_v15 = vand.u32 2147483648, %v764_v10  ;;  %v789_v17 = vand.u32 2147483647, %v764_v10  ;;  %vm785_vm7 = vweird.f32 %v764_v10 }
 0x193   : > { %v769_v3 = vadd.f32 %v1129_v57, %v768_v62 }
 0x194   : > { %v792_v63 = vor.u32 1.1754944e-38, %v791_v15  ;;  %vm790_vm9 = vcmp.eq.f32.partialorder %v789_v17, 8.507059e+37 }
 0x195   : > { %v773_v27 = vsel %vm772_vm3, %v1129_v57, %v769_v3 }
 0x196   : > { %v778_v6 = vsel %vm775_vm4, %v777_v5, %v773_v27 }
 0x197   : > { %v795_v7 = vmul.f32 %v778_v6, %v749_v33 }
 0x198   : > { %v1131_v13 = vpop.eup %1130 }
 0x199   : > { %827 = vmatpush.msrb.mxu0 %v795_v7  ;;  %1051 = vmatpush.msra.mxu2 %v795_v7  ;;  %797 = vst [vmem:[%s1592_s23] sm:$0xff] %v795_v7  ;;  %v781_v14 = vmul.f32 %v1131_v13, %v764_v10  ;;  %vm786_vm6 = vweird.f32 %v1131_v13 }
 0x19a   : > { %1033 = vmatmul.msk.f32.vlgmr.msra.gmra.mxu2 %vm799_vm5, %v317_v4  ;;  %1032 = vmatmul.msk.f32.vlgmr.msrb.gmra.mxu0 %vm799_vm5, %v316_v12  ;;  %vm787_vm8 = vmor %vm785_vm7, %vm786_vm6 }
 0x19b   : > { %v782_v45 = vsub.f32 1.0, %v781_v14 }
 0x19d   : > { %v783_v16 = vmul.f32 %v1131_v13, %v782_v45 }
 0x19f   : > { %v784_v29 = vadd.f32 %v1131_v13, %v783_v16 }
 0x1a1   : > { %v788_v30 = vsel %vm787_vm8, %v1131_v13, %v784_v29 }
 0x1a2   : > { %1034 = vmatmul.msk.f32.gmra.mxu2 %vm799_vm5, %v318_v11  ;;  %v793_v31 = vsel %vm790_vm9, %v792_v63, %v788_v30 }
 0x1a3   : > { %v796_v32 = vmul.f32 %v793_v31, %v750_v35 }
 0x1a5   : > { %856 = vmatpush.msrb.mxu1 %v796_v32  ;;  %1052 = vmatpush.msra.mxu3 %v796_v32  ;;  %798 = vst [vmem:[%s1592_s23 + $0x8] sm:$0xff] %v796_v32 }
 0x1a6   : > { %1037 = vmatmul.msk.f32.vlgmr.msra.gmra.mxu3 %vm799_vm5, %v317_v4  ;;  %1036 = vmatmul.msk.f32.vlgmr.msrb.gmra.mxu1 %vm799_vm5, %v316_v12 }
 0x1aa   : > { %1035 = vmatmul.msk.f32.gmra.mxu2 %vm799_vm5, %v319_v25 }
 0x1ae   : > { %1038 = vmatmul.msk.f32.gmra.mxu3 %vm799_vm5, %v318_v11 }
 0x1b6   : > { %1039 = vmatmul.msk.f32.gmra.mxu3 %vm799_vm5, %v319_v25 }
 0x1b7   : > { %1189 = shalt.err (!%p1186_p7)
}
 0x1b8   : > { %1055 = dma.vmem_to_hbm [thread:$0]  (%p1369_p11), %s898_s16, 256, %s900_s21, %s879_s10  }
 0x1b9   : > { %s1683_s23 = sshll.u32 %s1403_s17, 6  ;;  %s910_s12 = scalar_lea.hbm %s1674_s7, %s1049_s30 }
 0x1ba   : > { %s310_s19 = scalar_lea.vmem [#allocation7], %s1683_s23  ;;  %s913_s16 = sshll.u32 %s910_s12, 4  ;;  %s914_s16 = int_to_ptr.hbm [resolvable:$true] %s913_s16 }
 0x1bb   : > { %s911_s20 = sshll.u32 %s310_s19, 4  ;;  %s884_s21 = scalar_lea.sflag [#allocation8], %s1403_s17  ;;  %s912_s20 = int_to_ptr.vmem [resolvable:$true] %s911_s20 }
 0x1bc   : > { %s1204_s10 = sshra.s32 %s914_s16, 4  ;;  %s1210_s24 = scalar_lea.hbm %s1674_s7, 128  ;;  %s1205_s10 = int_to_ptr.hbm [resolvable:$true] %s1204_s10 }
 0x1bd   : > { %s1206_s18 = scalar_lea.hbm %s1205_s10, 64  ;;  %p1211_p2 = scmp.lt.s32.totalorder %s1205_s10, %s1674_s7 }
 0x1be   : > { %p1207_p8 = scmp.ne.s32.totalorder %s1205_s10, %s1206_s18  ;;  %p1212_p6 = scmp.lt.s32.totalorder %s1210_s24, %s1206_s18 }
 0x1c0   : > { %p1208_p10 = pnand %p1207_p8, %p1369_p11  ;;  %p1213_p13 = por %p1212_p6, %p1211_p2 }
 0x1c2   : > { %p1209_p1 = pneg %p1208_p10 }
 0x1c4   : > { %p1214_p0 = pnand %p1213_p13, %p1209_p1 }
 0x217   : > { %v829_v34 = vpop.f32.mrf.mxu0 }
 0x218   : > { %870 = vst [vmem:[%s310_s19] sm:$0xff] %v829_v34 }
 0x21d   : > { %v832_v33 = vpop.f32.mrf.mxu2 }
 0x21e   : > { %872 = vst [vmem:[%s310_s19 + $0x10] sm:$0xff] %v832_v33 }
 0x223   : > { %v858_v36 = vpop.f32.mrf.mxu1 }
 0x224   : > { %871 = vst [vmem:[%s310_s19 + $0x8] sm:$0xff] %v858_v36 }
 0x225   : > { %v835_v58 = vpop.f32.mrf.mxu2 }
 0x226   : > { %874 = vst [vmem:[%s310_s19 + $0x20] sm:$0xff] %v835_v58 }
 0x229   : > { %v861_v39 = vpop.f32.mrf.mxu3 }
 0x22a   : > { %873 = vst [vmem:[%s310_s19 + $0x18] sm:$0xff] %v861_v39 }
 0x22d   : > { %v838_v38 = vpop.f32.mrf.mxu2 }
 0x22e   : > { %876 = vst [vmem:[%s310_s19 + $0x30] sm:$0xff] %v838_v38 }
 0x231   : > { %v864_v1 = vpop.f32.mrf.mxu3 }
 0x232   : > { %875 = vst [vmem:[%s310_s19 + $0x28] sm:$0xff] %v864_v1 }
 0x239   : > { %v867_v40 = vpop.f32.mrf.mxu3 }
 0x23a   : > { %877 = vst [vmem:[%s310_s19 + $0x38] sm:$0xff] %v867_v40 }
 0x23b   : > { %1217 = shalt.err (!%p1214_p0)
}
 0x23c   : > { %s1273_s17 = smov 256   ;;  %s1274_s25 = smov 512  }
 0x23d   : > { %s1275_s23 = smov 16  }
 0x23e   : > { %1056 = dma.vmem_to_hbm [thread:$0]  (%p1369_p11), %s912_s20, 1024, %s914_s16, %s884_s21, %s1273_s17, %s1274_s25, %s1275_s23  }
 0x23f PF: > { %s928_s19 = sand.u32 1, %s1248_s26   ;;  %p1064_p3 = pnand %p1022_p9, %p1373_p12 }
 0x240   : > { %s929_s1 = scalar_lea.sflag [#allocation5], %s928_s19 }
 0x241   : > { %p1065_p4 = pneg %p1064_p3 }
 0x243   : > { %1239 = dma.done.wait (%p1065_p4), %s929_s1, 256  }
 0x244   : > { %1241 = vsyncadd (%p1065_p4), %s929_s1, 4294967040  ;;  %s939_s9 = scalar_lea.sflag [#allocation8], %s928_s19 }
 0x245   : > { %1243 = dma.done.wait (%p1065_p4), %s939_s9, 1024  }
 0x246   : > { %1245 = vsyncadd (%p1065_p4), %s939_s9, 4294966272  ;;  %p25_p11 = scmp.ge.s32.totalorder %s1344_s8, 4   ;;  %s1684_s26 = smov %s1252_s27 }
 0x247   : > { %s1685_s27 = smov %s1256_s28  ;;  %s1686_s28 = smov %s1356_s11 }
 0x248   : > { %s1687_s29 = smov %s1344_s8  ;;  %27 = sbr.rel (!%p25_p11) target bundleno = 10 (0xa), region = 106 }
 0x24d   :  { %945 = vsyncpa [#allocation4], 1 }
 0x24e   :  { %947 = vsyncpa [#allocation4 + $0x1], 1 }
 0x24f   :  { %948 = vsyncpa [#allocation5], 1 }
 0x250   :  { %950 = vsyncpa [#allocation5 + $0x1], 1 }
 0x251   :  { %951 = vsyncpa [#allocation8], 1 }
 0x252   :  { %953 = vsyncpa [#allocation8 + $0x1], 1 }

</bundles_post_ra>
